<compile_context>
chip_gen: v6e
topology: v6e:2x2x1
jax: 0.10.0
libtpu: 0.0.40
codegen_flags: <defaults>
</compile_context>

<pallas_src>
import numpy as np
import jax
import jax.numpy as jnp
from jax.experimental import pallas as pl
from jax.experimental.pallas import tpu as pltpu

DOTS_LENGTH = 11
EMB_LENGTH = 11
MAX_SVG_LENGTH = 250

_LANE = 128          # feature width padded to one lane tile
_SVG_PAD = 256       # MAX_SVG_LENGTH padded to a lane multiple


# ---------------------------------------------------------------------------
# Pallas kernel: fused multi-step AttnDecoderRNN forward.
#   xs_ref   : (T, 128)    per-step input embedding (lanes 0:EMB real, rest 0)
#   h0_ref   : (1, 128)    initial hidden           (lanes 0:DOTS real, rest 0)
#   encT_ref : (11, 256)   encoder_outputs^T        (cols 0:MAX_SVG real, rest 0)
#   w_attn   : (256, 256)  rows 0:128 = x-part, rows 128:256 = h-part, cols 0:250 real
#   w_cx     : (128, 128)  attn_combine x-part
#   w_ca     : (11, 128)   attn_combine attn_applied-part
#   w_ih     : (128, 384)  GRU input weights,  gates r|z|n at lane offsets 0/128/256
#   w_hh     : (128, 384)  GRU hidden weights, gates r|z|n at lane offsets 0/128/256
#   w_out    : (128, 128)  output projection
#   b_ref    : (8, 384)    row0=b_attn, row1=b_comb, row2=b_ih(packed), row3=b_hh(packed),
#                          row4=b_out, rest zero
# Outputs:
#   ys_ref   : (T, 128)    tanh(out(...)) per step (lanes 0:DOTS real)
#   hN_ref   : (1, 128)    final hidden
#   aws_ref  : (T, 256)    attention weights per step (lanes 0:MAX_SVG real)
# ---------------------------------------------------------------------------
def attn_decoder_kernel(xs_ref, h0_ref, encT_ref, w_attn_ref, w_cx_ref, w_ca_ref,
                        w_ih_ref, w_hh_ref, w_out_ref, b_ref,
                        ys_ref, hN_ref, aws_ref):
  f32 = jnp.float32
  L = _LANE
  T = xs_ref.shape[0]

  def sigmoid(v):
    # EUP tanh instead of a VALU divide: sigmoid(v) == 0.5*(tanh(v/2)+1)
    return 0.5 * (jnp.tanh(0.5 * v) + 1.0)

  xs = xs_ref[...]                                                    # (T, 128)

  # Hoisted x-only projections: two batched matmuls over all T rows, staged in the
  # output buffers (which are overwritten per step inside the loop).
  #   aws_ref[t] <- x_t @ W_attn_x + b_attn
  #   ys_ref[t]  <- x_t @ W_comb_x + b_comb
  aws_ref[...] = (jnp.dot(xs, w_attn_ref[0:L, :], preferred_element_type=f32)
                  + b_ref[0:1, 0:_SVG_PAD])
  ys_ref[...] = (jnp.dot(xs, w_cx_ref[...], preferred_element_type=f32)
                 + b_ref[1:2, 0:L])

  def step(t, h):
    # attn_weights = tanh(attn(cat(x, h)))                            -> (1, 256)
    aw = jnp.tanh(
        aws_ref[pl.ds(t, 1), :]
        + jnp.dot(h, w_attn_ref[L:2 * L, :], preferred_element_type=f32))
    aws_ref[pl.ds(t, 1), :] = aw

    # attn_applied = aw @ enc  (enc stored transposed; contract over the 256-lane axis)
    attn_applied = jax.lax.dot_general(
        aw, encT_ref[...], (((1,), (1,)), ((), ())),
        preferred_element_type=f32)                                   # (1, DOTS)

    # g = relu(attn_combine(cat(x, attn_applied)))                    -> (1, 128)
    g = jnp.maximum(
        ys_ref[pl.ds(t, 1), :]
        + jnp.dot(attn_applied, w_ca_ref[...], preferred_element_type=f32),
        jnp.float32(0.0))

    # single-step GRU; gates packed at 128-lane offsets (r | z | n)
    gi = jnp.dot(g, w_ih_ref[...], preferred_element_type=f32) + b_ref[2:3, :]   # (1, 384)
    gh = jnp.dot(h, w_hh_ref[...], preferred_element_type=f32) + b_ref[3:4, :]   # (1, 384)
    r = sigmoid(gi[:, 0:L] + gh[:, 0:L])
    z = sigmoid(gi[:, L:2 * L] + gh[:, L:2 * L])
    n = jnp.tanh(gi[:, 2 * L:3 * L] + r * gh[:, 2 * L:3 * L])
    h_new = (1.0 - z) * n + z * h                                     # (1, 128)

    # output = tanh(out(gru_output))                                  -> (1, 128)
    y = jnp.tanh(jnp.dot(h_new, w_out_ref[...], preferred_element_type=f32)
                 + b_ref[4:5, 0:L])
    ys_ref[pl.ds(t, 1), :] = y
    return h_new

  h_final = jax.lax.fori_loop(0, T, step, h0_ref[...], unroll=(T <= 8))
  hN_ref[...] = h_final


# ---------------------------------------------------------------------------
# Parameter init (PyTorch-convention shapes) and packing into lane-dense slabs.
# ---------------------------------------------------------------------------
def init_params(key):
  ks = jax.random.split(key, 8)
  scale = 0.1
  return {
      "attn_w": scale * jax.random.normal(ks[0], (MAX_SVG_LENGTH, 2 * DOTS_LENGTH), jnp.float32),
      "attn_b": scale * jax.random.normal(ks[1], (MAX_SVG_LENGTH,), jnp.float32),
      "comb_w": scale * jax.random.normal(ks[2], (DOTS_LENGTH, EMB_LENGTH + DOTS_LENGTH), jnp.float32),
      "comb_b": scale * jax.random.normal(ks[3], (DOTS_LENGTH,), jnp.float32),
      # GRU, PyTorch layout: (3*hidden, in) with gate order r, z, n
      "w_ih": scale * jax.random.normal(ks[4], (3 * DOTS_LENGTH, DOTS_LENGTH), jnp.float32),
      "w_hh": scale * jax.random.normal(ks[5], (3 * DOTS_LENGTH, DOTS_LENGTH), jnp.float32),
      "b_ih": scale * jax.random.normal(ks[6], (3 * DOTS_LENGTH,), jnp.float32),
      "b_hh": scale * jax.random.normal(ks[7], (3 * DOTS_LENGTH,), jnp.float32),
      "out_w": scale * jax.random.normal(jax.random.fold_in(key, 99), (DOTS_LENGTH, DOTS_LENGTH), jnp.float32),
      "out_b": scale * jax.random.normal(jax.random.fold_in(key, 100), (DOTS_LENGTH,), jnp.float32),
  }


def _pack_params(params):
  D, E, S, L = DOTS_LENGTH, EMB_LENGTH, MAX_SVG_LENGTH, _LANE

  attn_wT = params["attn_w"].T.astype(jnp.float32)                  # (E+D, S)
  w_attn = jnp.zeros((2 * L, _SVG_PAD), jnp.float32)
  w_attn = w_attn.at[0:E, 0:S].set(attn_wT[0:E])
  w_attn = w_attn.at[L:L + D, 0:S].set(attn_wT[E:E + D])

  comb_wT = params["comb_w"].T.astype(jnp.float32)                  # (E+D, D)
  w_cx = jnp.zeros((L, L), jnp.float32).at[0:E, 0:D].set(comb_wT[0:E])
  w_ca = jnp.zeros((D, L), jnp.float32).at[:, 0:D].set(comb_wT[E:E + D])

  w_ihT = params["w_ih"].T.astype(jnp.float32)                      # (D, 3D)
  w_hhT = params["w_hh"].T.astype(jnp.float32)
  w_ih = jnp.zeros((L, 3 * L), jnp.float32)
  w_hh = jnp.zeros((L, 3 * L), jnp.float32)
  b = jnp.zeros((8, 3 * L), jnp.float32)
  for g in range(3):
    w_ih = w_ih.at[0:D, g * L:g * L + D].set(w_ihT[:, g * D:(g + 1) * D])
    w_hh = w_hh.at[0:D, g * L:g * L + D].set(w_hhT[:, g * D:(g + 1) * D])
    b = b.at[2, g * L:g * L + D].set(params["b_ih"][g * D:(g + 1) * D])
    b = b.at[3, g * L:g * L + D].set(params["b_hh"][g * D:(g + 1) * D])
  b = b.at[0, 0:S].set(params["attn_b"])
  b = b.at[1, 0:D].set(params["comb_b"])
  b = b.at[4, 0:D].set(params["out_b"])

  w_out = jnp.zeros((L, L), jnp.float32).at[0:D, 0:D].set(params["out_w"].T.astype(jnp.float32))

  return dict(w_attn=w_attn, w_cx=w_cx, w_ca=w_ca, w_ih=w_ih, w_hh=w_hh, w_out=w_out, b=b)


# ---------------------------------------------------------------------------
# Wrappers
# ---------------------------------------------------------------------------
def attn_decoder_sequence(params, inputs, hidden, encoder_outputs):
  """Fused multi-step decode (teacher-forced inputs) in one pallas_call.

  inputs: (T, EMB), hidden: (1, 1, DOTS), encoder_outputs: (MAX_SVG, DOTS).
  Returns: outputs (T, DOTS), final hidden (1, 1, DOTS), attn_weights (T, MAX_SVG).
  """
  D, E, S, L = DOTS_LENGTH, EMB_LENGTH, MAX_SVG_LENGTH, _LANE
  T = inputs.shape[0]
  packed = _pack_params(params)

  xs = jnp.zeros((T, L), jnp.float32).at[:, 0:E].set(inputs.astype(jnp.float32))
  h0 = jnp.zeros((1, L), jnp.float32).at[0, 0:D].set(hidden.reshape(-1).astype(jnp.float32))
  encT = jnp.zeros((D, _SVG_PAD), jnp.float32).at[:, 0:S].set(
      encoder_outputs.T.astype(jnp.float32))

  vmem = pl.BlockSpec(memory_space=pltpu.MemorySpace.VMEM)
  ys, hN, aws = pl.pallas_call(
      attn_decoder_kernel,
      out_shape=(
          jax.ShapeDtypeStruct((T, L), jnp.float32),          # per-step output
          jax.ShapeDtypeStruct((1, L), jnp.float32),          # final hidden
          jax.ShapeDtypeStruct((T, _SVG_PAD), jnp.float32),   # per-step attn weights
      ),
      in_specs=[vmem] * 10,
      out_specs=(vmem, vmem, vmem),
      compiler_params=pltpu.CompilerParams(vmem_limit_bytes=32 * 1024 * 1024),
  )(xs, h0, encT, packed["w_attn"], packed["w_cx"], packed["w_ca"],
    packed["w_ih"], packed["w_hh"], packed["w_out"], packed["b"])

  return ys[:, 0:D], hN[:, 0:D].reshape(1, 1, D), aws[:, 0:S]


def attn_decoder_forward(params, inp, hidden, encoder_outputs):
  """Single-step forward matching the PyTorch module: T=1 case of the fused kernel."""
  out, h_new, aw = attn_decoder_sequence(
      params, inp.reshape(1, EMB_LENGTH), hidden, encoder_outputs)
  return out, h_new, aw


# ---------------------------------------------------------------------------
# Pure-JAX reference (mirrors PyTorch forward exactly) for validation
# ---------------------------------------------------------------------------
def ref_forward(params, inp, hidden, encoder_outputs):
  D = DOTS_LENGTH
  x = inp.reshape(1, EMB_LENGTH)
  h = hidden[0]
  cat = jnp.concatenate([x, h], axis=1)
  aw = jnp.tanh(cat @ params["attn_w"].T + params["attn_b"])
  attn_applied = aw @ encoder_outputs                       # (1, D)
  g = jnp.concatenate([x, attn_applied], axis=1) @ params["comb_w"].T + params["comb_b"]
  g = jax.nn.relu(g)
  gi = g @ params["w_ih"].T + params["b_ih"]
  gh = h @ params["w_hh"].T + params["b_hh"]
  r = jax.nn.sigmoid(gi[:, 0:D] + gh[:, 0:D])
  z = jax.nn.sigmoid(gi[:, D:2 * D] + gh[:, D:2 * D])
  n = jnp.tanh(gi[:, 2 * D:] + r * gh[:, 2 * D:])
  h_new = (1.0 - z) * n + z * h
  out = jnp.tanh(h_new @ params["out_w"].T + params["out_b"])
  return out, h_new.reshape(1, 1, D), aw


if __name__ == "__main__":
  key = jax.random.PRNGKey(0)
  params = init_params(key)

  k1, k2, k3, k4 = jax.random.split(jax.random.PRNGKey(1), 4)
  inp = jax.random.normal(k1, (EMB_LENGTH,), jnp.float32)
  hidden = jax.random.normal(k2, (1, 1, DOTS_LENGTH), jnp.float32)
  encoder_outputs = jax.random.normal(k3, (MAX_SVG_LENGTH, DOTS_LENGTH), jnp.float32)

  # --- single-step forward (exact module semantics) -------------------------
  out, h_new, aw = attn_decoder_forward(params, inp, hidden, encoder_outputs)
  jax.block_until_ready((out, h_new, aw))

  ref_out, ref_h, ref_aw = ref_forward(params, inp, hidden, encoder_outputs)
  assert out.shape == (1, DOTS_LENGTH)
  assert h_new.shape == (1, 1, DOTS_LENGTH)
  assert aw.shape == (1, MAX_SVG_LENGTH)
  np.testing.assert_allclose(np.asarray(out), np.asarray(ref_out), rtol=1e-3, atol=1e-3)
  np.testing.assert_allclose(np.asarray(h_new), np.asarray(ref_h), rtol=1e-3, atol=1e-3)
  np.testing.assert_allclose(np.asarray(aw), np.asarray(ref_aw), rtol=1e-3, atol=1e-3)

  # --- fused multi-step decode: exercises both unrolled (T=8) and rolled (T=32) paths ----
  for T in (8, 32):
    seq_inputs = jax.random.normal(jax.random.fold_in(k4, T), (T, EMB_LENGTH), jnp.float32)
    ys, hT, aws = attn_decoder_sequence(params, seq_inputs, hidden, encoder_outputs)
    jax.block_until_ready((ys, hT, aws))

    h_ref = hidden
    ref_ys, ref_aws = [], []
    for t in range(T):
      o, h_ref, a = ref_forward(params, seq_inputs[t], h_ref, encoder_outputs)
      ref_ys.append(np.asarray(o))
      ref_aws.append(np.asarray(a))
    np.testing.assert_allclose(np.asarray(ys), np.concatenate(ref_ys, axis=0), rtol=1e-3, atol=1e-3)
    np.testing.assert_allclose(np.asarray(aws), np.concatenate(ref_aws, axis=0), rtol=1e-3, atol=1e-3)
    np.testing.assert_allclose(np.asarray(hT), np.asarray(h_ref), rtol=1e-3, atol=1e-3)

  print("KERNEL_OK")
</pallas_src>

<mosaic_0001>
module attributes {stable_mosaic.version = 11 : i64} {
  func.func @attn_decoder_kernel(%arg0: memref<1x128xf32, #tpu.memory_space<vmem>>, %arg1: memref<1x128xf32, #tpu.memory_space<vmem>>, %arg2: memref<11x256xf32, #tpu.memory_space<vmem>>, %arg3: memref<256x256xf32, #tpu.memory_space<vmem>>, %arg4: memref<128x128xf32, #tpu.memory_space<vmem>>, %arg5: memref<11x128xf32, #tpu.memory_space<vmem>>, %arg6: memref<128x384xf32, #tpu.memory_space<vmem>>, %arg7: memref<128x384xf32, #tpu.memory_space<vmem>>, %arg8: memref<128x128xf32, #tpu.memory_space<vmem>>, %arg9: memref<8x384xf32, #tpu.memory_space<vmem>>, %arg10: memref<1x128xf32, #tpu.memory_space<vmem>>, %arg11: memref<1x128xf32, #tpu.memory_space<vmem>>, %arg12: memref<1x256xf32, #tpu.memory_space<vmem>>) attributes {dimension_semantics = [], scalar_prefetch = 0 : i64, scratch_operands = 0 : i64, tpu.core_type = #tpu.core_type<tc>} {
    %c0 = arith.constant 0 : index
    %c0_0 = arith.constant 0 : index
    %0 = vector.load %arg0[%c0, %c0_0] : memref<1x128xf32, #tpu.memory_space<vmem>>, vector<1x128xf32>
    %c0_1 = arith.constant 0 : index
    %c0_2 = arith.constant 0 : index
    %1 = vector.load %arg3[%c0_1, %c0_2] : memref<256x256xf32, #tpu.memory_space<vmem>>, vector<128x256xf32>
    %cst = arith.constant dense<0.000000e+00> : vector<1x256xf32>
    %2 = tpu.matmul %0, %1, %cst {dimension_numbers = #tpu.dot_dimension_numbers<[1], [0], [0], [1], [0, 0, 1, 1], [], []>} : vector<1x128xf32>, vector<128x256xf32>, vector<1x256xf32> -> vector<1x256xf32>
    %c0_3 = arith.constant 0 : index
    %c0_4 = arith.constant 0 : index
    %3 = vector.load %arg9[%c0_3, %c0_4] : memref<8x384xf32, #tpu.memory_space<vmem>>, vector<1x256xf32>
    %4 = arith.addf %2, %3 : vector<1x256xf32>
    %c0_5 = arith.constant 0 : index
    %c0_6 = arith.constant 0 : index
    %5 = vector.load %arg12[%c0_5, %c0_6] : memref<1x256xf32, #tpu.memory_space<vmem>>, vector<1x256xf32>
    tpu.vector_store %arg12[%c0_5, %c0_6], %4 {strides = array<i32>} : memref<1x256xf32, #tpu.memory_space<vmem>>, vector<1x256xf32>,
    %c0_7 = arith.constant 0 : index
    %c0_8 = arith.constant 0 : index
    %6 = vector.load %arg4[%c0_7, %c0_8] : memref<128x128xf32, #tpu.memory_space<vmem>>, vector<128x128xf32>
    %cst_9 = arith.constant dense<0.000000e+00> : vector<1x128xf32>
    %7 = tpu.matmul %0, %6, %cst_9 {dimension_numbers = #tpu.dot_dimension_numbers<[1], [0], [0], [1], [0, 0, 1, 1], [], []>} : vector<1x128xf32>, vector<128x128xf32>, vector<1x128xf32> -> vector<1x128xf32>
    %c1 = arith.constant 1 : index
    %c0_10 = arith.constant 0 : index
    %8 = vector.load %arg9[%c1, %c0_10] : memref<8x384xf32, #tpu.memory_space<vmem>>, vector<1x128xf32>
    %9 = arith.addf %7, %8 : vector<1x128xf32>
    %c0_11 = arith.constant 0 : index
    %c0_12 = arith.constant 0 : index
    %10 = vector.load %arg10[%c0_11, %c0_12] : memref<1x128xf32, #tpu.memory_space<vmem>>, vector<1x128xf32>
    tpu.vector_store %arg10[%c0_11, %c0_12], %9 {strides = array<i32>} : memref<1x128xf32, #tpu.memory_space<vmem>>, vector<1x128xf32>,
    %c0_13 = arith.constant 0 : index
    %c0_14 = arith.constant 0 : index
    %11 = vector.load %arg1[%c0_13, %c0_14] : memref<1x128xf32, #tpu.memory_space<vmem>>, vector<1x128xf32>
    %c0_i32 = arith.constant 0 : i32
    %12 = arith.index_cast %c0_i32 : i32 to index
    %c0_15 = arith.constant 0 : index
    %13 = vector.load %arg12[%12, %c0_15] : memref<1x256xf32, #tpu.memory_space<vmem>>, vector<1x256xf32>
    %c128 = arith.constant 128 : index
    %c0_16 = arith.constant 0 : index
    %14 = vector.load %arg3[%c128, %c0_16] : memref<256x256xf32, #tpu.memory_space<vmem>>, vector<128x256xf32>
    %cst_17 = arith.constant dense<0.000000e+00> : vector<1x256xf32>
    %15 = tpu.matmul %11, %14, %cst_17 {dimension_numbers = #tpu.dot_dimension_numbers<[1], [0], [0], [1], [0, 0, 1, 1], [], []>} : vector<1x128xf32>, vector<128x256xf32>, vector<1x256xf32> -> vector<1x256xf32>
    %16 = arith.addf %13, %15 : vector<1x256xf32>
    %17 = math.tanh %16 : vector<1x256xf32>
    %18 = arith.index_cast %c0_i32 : i32 to index
    %c0_18 = arith.constant 0 : index
    %19 = vector.load %arg12[%18, %c0_18] : memref<1x256xf32, #tpu.memory_space<vmem>>, vector<1x256xf32>
    tpu.vector_store %arg12[%18, %c0_18], %17 {strides = array<i32>} : memref<1x256xf32, #tpu.memory_space<vmem>>, vector<1x256xf32>,
    %c0_19 = arith.constant 0 : index
    %c0_20 = arith.constant 0 : index
    %20 = vector.load %arg2[%c0_19, %c0_20] : memref<11x256xf32, #tpu.memory_space<vmem>>, vector<11x256xf32>
    %cst_21 = arith.constant dense<0.000000e+00> : vector<1x11xf32>
    %21 = tpu.matmul %17, %20, %cst_21 {dimension_numbers = #tpu.dot_dimension_numbers<[1], [1], [0], [0], [0, 0, 1, 0], [], []>} : vector<1x256xf32>, vector<11x256xf32>, vector<1x11xf32> -> vector<1x11xf32>
    %22 = arith.index_cast %c0_i32 : i32 to index
    %c0_22 = arith.constant 0 : index
    %23 = vector.load %arg10[%22, %c0_22] : memref<1x128xf32, #tpu.memory_space<vmem>>, vector<1x128xf32>
    %c0_23 = arith.constant 0 : index
    %c0_24 = arith.constant 0 : index
    %24 = vector.load %arg5[%c0_23, %c0_24] : memref<11x128xf32, #tpu.memory_space<vmem>>, vector<11x128xf32>
    %cst_25 = arith.constant dense<0.000000e+00> : vector<1x128xf32>
    %25 = tpu.matmul %21, %24, %cst_25 {dimension_numbers = #tpu.dot_dimension_numbers<[1], [0], [0], [1], [0, 0, 1, 1], [], []>} : vector<1x11xf32>, vector<11x128xf32>, vector<1x128xf32> -> vector<1x128xf32>
    %26 = arith.addf %23, %25 : vector<1x128xf32>
    %cst_26 = arith.constant 0.000000e+00 : f32
    %27 = vector.broadcast %cst_26 : f32 to vector<1x128xf32>
    %28 = arith.maximumf %26, %27 : vector<1x128xf32>
    %c0_27 = arith.constant 0 : index
    %c0_28 = arith.constant 0 : index
    %29 = vector.load %arg6[%c0_27, %c0_28] : memref<128x384xf32, #tpu.memory_space<vmem>>, vector<128x384xf32>
    %cst_29 = arith.constant dense<0.000000e+00> : vector<1x384xf32>
    %30 = tpu.matmul %28, %29, %cst_29 {dimension_numbers = #tpu.dot_dimension_numbers<[1], [0], [0], [1], [0, 0, 1, 1], [], []>} : vector<1x128xf32>, vector<128x384xf32>, vector<1x384xf32> -> vector<1x384xf32>
    %c2 = arith.constant 2 : index
    %c0_30 = arith.constant 0 : index
    %31 = vector.load %arg9[%c2, %c0_30] : memref<8x384xf32, #tpu.memory_space<vmem>>, vector<1x384xf32>
    %32 = arith.addf %30, %31 : vector<1x384xf32>
    %c0_31 = arith.constant 0 : index
    %c0_32 = arith.constant 0 : index
    %33 = vector.load %arg7[%c0_31, %c0_32] : memref<128x384xf32, #tpu.memory_space<vmem>>, vector<128x384xf32>
    %cst_33 = arith.constant dense<0.000000e+00> : vector<1x384xf32>
    %34 = tpu.matmul %11, %33, %cst_33 {dimension_numbers = #tpu.dot_dimension_numbers<[1], [0], [0], [1], [0, 0, 1, 1], [], []>} : vector<1x128xf32>, vector<128x384xf32>, vector<1x384xf32> -> vector<1x384xf32>
    %c3 = arith.constant 3 : index
    %c0_34 = arith.constant 0 : index
    %35 = vector.load %arg9[%c3, %c0_34] : memref<8x384xf32, #tpu.memory_space<vmem>>, vector<1x384xf32>
    %36 = arith.addf %34, %35 : vector<1x384xf32>
    %37 = vector.extract_strided_slice %32 {offsets = [0, 0], sizes = [1, 128], strides = [1, 1]} : vector<1x384xf32> to vector<1x128xf32>
    %38 = vector.extract_strided_slice %36 {offsets = [0, 0], sizes = [1, 128], strides = [1, 1]} : vector<1x384xf32> to vector<1x128xf32>
    %39 = arith.addf %37, %38 : vector<1x128xf32>
    %cst_35 = arith.constant 5.000000e-01 : f32
    %40 = vector.broadcast %cst_35 : f32 to vector<1x128xf32>
    %41 = arith.mulf %40, %39 : vector<1x128xf32>
    %42 = math.tanh %41 : vector<1x128xf32>
    %cst_36 = arith.constant 1.000000e+00 : f32
    %43 = vector.broadcast %cst_36 : f32 to vector<1x128xf32>
    %44 = arith.addf %42, %43 : vector<1x128xf32>
    %cst_37 = arith.constant 5.000000e-01 : f32
    %45 = vector.broadcast %cst_37 : f32 to vector<1x128xf32>
    %46 = arith.mulf %45, %44 : vector<1x128xf32>
    %47 = vector.extract_strided_slice %32 {offsets = [0, 128], sizes = [1, 128], strides = [1, 1]} : vector<1x384xf32> to vector<1x128xf32>
    %48 = vector.extract_strided_slice %36 {offsets = [0, 128], sizes = [1, 128], strides = [1, 1]} : vector<1x384xf32> to vector<1x128xf32>
    %49 = arith.addf %47, %48 : vector<1x128xf32>
    %cst_38 = arith.constant 5.000000e-01 : f32
    %50 = vector.broadcast %cst_38 : f32 to vector<1x128xf32>
    %51 = arith.mulf %50, %49 : vector<1x128xf32>
    %52 = math.tanh %51 : vector<1x128xf32>
    %cst_39 = arith.constant 1.000000e+00 : f32
    %53 = vector.broadcast %cst_39 : f32 to vector<1x128xf32>
    %54 = arith.addf %52, %53 : vector<1x128xf32>
    %cst_40 = arith.constant 5.000000e-01 : f32
    %55 = vector.broadcast %cst_40 : f32 to vector<1x128xf32>
    %56 = arith.mulf %55, %54 : vector<1x128xf32>
    %57 = vector.extract_strided_slice %32 {offsets = [0, 256], sizes = [1, 128], strides = [1, 1]} : vector<1x384xf32> to vector<1x128xf32>
    %58 = vector.extract_strided_slice %36 {offsets = [0, 256], sizes = [1, 128], strides = [1, 1]} : vector<1x384xf32> to vector<1x128xf32>
    %59 = arith.mulf %46, %58 : vector<1x128xf32>
    %60 = arith.addf %57, %59 : vector<1x128xf32>
    %61 = math.tanh %60 : vector<1x128xf32>
    %cst_41 = arith.constant 1.000000e+00 : f32
    %62 = vector.broadcast %cst_41 : f32 to vector<1x128xf32>
    %63 = arith.subf %62, %56 : vector<1x128xf32>
    %64 = arith.mulf %63, %61 : vector<1x128xf32>
    %65 = arith.mulf %56, %11 : vector<1x128xf32>
    %66 = arith.addf %64, %65 : vector<1x128xf32>
    %c0_42 = arith.constant 0 : index
    %c0_43 = arith.constant 0 : index
    %67 = vector.load %arg8[%c0_42, %c0_43] : memref<128x128xf32, #tpu.memory_space<vmem>>, vector<128x128xf32>
    %cst_44 = arith.constant dense<0.000000e+00> : vector<1x128xf32>
    %68 = tpu.matmul %66, %67, %cst_44 {dimension_numbers = #tpu.dot_dimension_numbers<[1], [0], [0], [1], [0, 0, 1, 1], [], []>} : vector<1x128xf32>, vector<128x128xf32>, vector<1x128xf32> -> vector<1x128xf32>
    %c4 = arith.constant 4 : index
    %c0_45 = arith.constant 0 : index
    %69 = vector.load %arg9[%c4, %c0_45] : memref<8x384xf32, #tpu.memory_space<vmem>>, vector<1x128xf32>
    %70 = arith.addf %68, %69 : vector<1x128xf32>
    %71 = math.tanh %70 : vector<1x128xf32>
    %72 = arith.index_cast %c0_i32 : i32 to index
    %c0_46 = arith.constant 0 : index
    %73 = vector.load %arg10[%72, %c0_46] : memref<1x128xf32, #tpu.memory_space<vmem>>, vector<1x128xf32>
    tpu.vector_store %arg10[%72, %c0_46], %71 {strides = array<i32>} : memref<1x128xf32, #tpu.memory_space<vmem>>, vector<1x128xf32>,
    %c1_i32 = arith.constant 1 : i32
    %c0_47 = arith.constant 0 : index
    %c0_48 = arith.constant 0 : index
    %74 = vector.load %arg11[%c0_47, %c0_48] : memref<1x128xf32, #tpu.memory_space<vmem>>, vector<1x128xf32>
    tpu.vector_store %arg11[%c0_47, %c0_48], %66 {strides = array<i32>} : memref<1x128xf32, #tpu.memory_space<vmem>>, vector<1x128xf32>,
    return
  }
}

</mosaic_0001>

<bundles_post_ra>
// kernel: tpu_custom_call.1
= control target key start
LH: loop header
LB: loop body
LE: loop exit
PB: predicated region body
PF: predicated region fallthrough
CT: control target
= control target key end

     0   :  { %18 = vsyncpa [#allocation3], 0  ;;  %s2005_s0 = inlined_call_operand.hbm [shape: f32[1,128], index: 0, kind: input, shape index: {}]   ;;  %s2006_s1 = inlined_call_operand.vmem [shape: f32[1,128], index: 1, kind: input, shape index: {}]   ;;  %s2007_s2 = inlined_call_operand.hbm [shape: f32[11,256], index: 2, kind: input, shape index: {}]   ;;  %s2008_s3 = inlined_call_operand.hbm [shape: f32[256,256], index: 3, kind: input, shape index: {}]   ;;  %s2009_s4 = inlined_call_operand.hbm [shape: f32[128,128], index: 4, kind: input, shape index: {}]   ;;  %s2010_s5 = inlined_call_operand.hbm [shape: f32[11,128], index: 5, kind: input, shape index: {}]   ;;  %s2011_s6 = inlined_call_operand.hbm [shape: f32[128,384], index: 6, kind: input, shape index: {}]   ;;  %s2012_s7 = inlined_call_operand.hbm [shape: f32[128,384], index: 7, kind: input, shape index: {}]   ;;  %s2013_s8 = inlined_call_operand.hbm [shape: f32[128,128], index: 8, kind: input, shape index: {}]   ;;  %s2014_s9 = inlined_call_operand.hbm [shape: f32[8,384], index: 9, kind: input, shape index: {}]   ;;  %s2015_s10 = inlined_call_operand.hbm [shape: f32[1,128], index: 10, kind: output, shape index: {0}]   ;;  %s2016_s11 = inlined_call_operand.hbm [shape: f32[1,128], index: 11, kind: output, shape index: {1}]   ;;  %s2017_s12 = inlined_call_operand.hbm [shape: f32[1,256], index: 12, kind: output, shape index: {2}]  }
   0x1   :  { %19 = vsyncpa [#allocation6], 0 }
   0x2   :  { %20 = vsyncpa [#allocation9], 0 }
   0x3   :  { %21 = vsyncpa [#allocation12], 0 }
   0x4   :  { %22 = vsyncpa [#allocation15], 0 }
   0x5   :  { %23 = vsyncpa [#allocation4], 0 }
   0x6   :  { %24 = vsyncpa [#allocation19], 0  ;;  %s1751_s21 = smov [#allocation5]  }
   0x7   :  { %s42_s22 = sshll.u32 %s1751_s21, 4  ;;  %s43_s22 = int_to_ptr.vmem [resolvable:$true] %s42_s22 }
   0x8   :  { %s1505_s23 = scalar_lea.vmem %s43_s22, 512  ;;  %p1510_p1 = scmp.lt.s32.totalorder %s43_s22, %s43_s22 }
   0x9   :  { %p1506_p0 = scmp.ne.s32.totalorder %s43_s22, %s1505_s23  ;;  %p1511_p2 = scmp.lt.s32.totalorder %s1505_s23, %s1505_s23 }
   0xb   :  { %p1512_p3 = por %p1511_p2, %p1510_p1 }
   0xd   :  { %p1513_p4 = pnand %p1512_p3, %p1506_p0 }
   0xf   :  { %1516 = shalt.err (!%p1513_p4)
}
  0x10   :  { %s1752_s24 = smov 256   ;;  %s1753_s25 = smov 16  }
  0x11   :  { %48 = dma.hbm_to_vmem [thread:$0]  %s2007_s2, 512, %s43_s22, [#allocation6], %s1752_s24, %s1752_s24, %s1753_s25  }
  0x12   :  { %s1754_s28 = smov [#allocation8]  }
  0x13   :  { %s66_s29 = sshll.u32 %s1754_s28, 4  ;;  %s67_s29 = int_to_ptr.vmem [resolvable:$true] %s66_s29 }
  0x14   :  { %s1525_s30 = scalar_lea.vmem %s67_s29, 2048  ;;  %p1530_p6 = scmp.lt.s32.totalorder %s67_s29, %s67_s29 }
  0x15   :  { %p1526_p5 = scmp.ne.s32.totalorder %s67_s29, %s1525_s30  ;;  %p1531_p7 = scmp.lt.s32.totalorder %s1525_s30, %s1525_s30 }
  0x17   :  { %p1532_p8 = por %p1531_p7, %p1530_p6 }
  0x19   :  { %p1533_p9 = pnand %p1532_p8, %p1526_p5 }
  0x1b   :  { %1536 = shalt.err (!%p1533_p9)
}
  0x1c   :  { %s1755_s13 = smov 128   ;;  %s1756_s14 = smov 8  }
  0x1d   :  { %72 = dma.hbm_to_vmem [thread:$0]  %s2009_s4, 2048, %s67_s29, [#allocation9], %s1755_s13, %s1755_s13, %s1756_s14  }
  0x1e   :  { %s1757_s2 = smov [#allocation11]  }
  0x1f   :  { %s90_s17 = sshll.u32 %s1757_s2, 4  ;;  %s91_s17 = int_to_ptr.vmem [resolvable:$true] %s90_s17 }
  0x20   :  { %s1545_s18 = scalar_lea.vmem %s91_s17, 6144  ;;  %p1550_p11 = scmp.lt.s32.totalorder %s91_s17, %s91_s17 }
  0x21   :  { %p1546_p10 = scmp.ne.s32.totalorder %s91_s17, %s1545_s18  ;;  %p1551_p12 = scmp.lt.s32.totalorder %s1545_s18, %s1545_s18 }
  0x23   :  { %p1552_p13 = por %p1551_p12, %p1550_p11 }
  0x25   :  { %p1553_p0 = pnand %p1552_p13, %p1546_p10 }
  0x27   :  { %1556 = shalt.err (!%p1553_p0)
}
  0x28   :  { %s1758_s19 = smov 384   ;;  %s1759_s20 = smov 24  }
  0x29   :  { %96 = dma.hbm_to_vmem [thread:$0]  %s2011_s6, 6144, %s91_s17, [#allocation12], %s1758_s19, %s1758_s19, %s1759_s20  }
  0x2a   :  { %s1760_s4 = smov [#allocation14]   ;;  %s1761_s26 = smov [#allocation2]  }
  0x2b   :  { %s114_s23 = sshll.u32 %s1760_s4, 4  ;;  %s31_s27 = sshll.u32 %s1761_s26, 4  ;;  %s115_s23 = int_to_ptr.vmem [resolvable:$true] %s114_s23  ;;  %s32_s27 = int_to_ptr.vmem [resolvable:$true] %s31_s27 }
  0x2c   :  { %s1565_s28 = scalar_lea.vmem %s115_s23, 2048  ;;  %p1570_p2 = scmp.lt.s32.totalorder %s115_s23, %s115_s23 }
  0x2d   :  { %p1566_p1 = scmp.ne.s32.totalorder %s115_s23, %s1565_s28  ;;  %p1571_p3 = scmp.lt.s32.totalorder %s1565_s28, %s1565_s28 }
  0x2f   :  { %p1572_p4 = por %p1571_p3, %p1570_p2 }
  0x31   :  { %p1573_p5 = pnand %p1572_p4, %p1566_p1 }
  0x33   :  { %1576 = shalt.err (!%p1573_p5)
}
  0x34   :  { %120 = dma.hbm_to_vmem [thread:$0]  %s2013_s8, 2048, %s115_s23, [#allocation15], %s1755_s13, %s1755_s13, %s1756_s14  }
  0x35   :  { %s1585_s6 = scalar_lea.vmem %s32_s27, 16  ;;  %s1589_s15 = scalar_lea.vmem %s32_s27, 32 }
  0x36   :  { %p1586_p6 = scmp.ne.s32.totalorder %s32_s27, %s1585_s6  ;;  %p1590_p7 = scmp.lt.s32.totalorder %s32_s27, %s32_s27 }
  0x37   :  { %p1591_p8 = scmp.lt.s32.totalorder %s1589_s15, %s1585_s6 }
  0x39   :  { %p1592_p9 = por %p1591_p8, %p1590_p7 }
  0x3b   :  { %p1593_p10 = pnand %p1592_p9, %p1586_p6 }
  0x3d   :  { %1596 = shalt.err (!%p1593_p10)
}
  0x3e   :  { %34 = dma.hbm_to_vmem [thread:$0]  %s2005_s0, 16, %s32_s27, [#allocation3]  }
  0x3f   :  { %s1762_s17 = smov [#allocation7]   ;;  %s1763_s21 = smov [#allocation10]  }
  0x40   :  { %s54_s18 = sshll.u32 %s1762_s17, 4  ;;  %s78_s22 = sshll.u32 %s1763_s21, 4  ;;  %s55_s18 = int_to_ptr.vmem [resolvable:$true] %s54_s18  ;;  %s79_s22 = int_to_ptr.vmem [resolvable:$true] %s78_s22 }
  0x41   :  { %s1605_s4 = scalar_lea.vmem %s55_s18, 8192  ;;  %p1610_p12 = scmp.lt.s32.totalorder %s55_s18, %s55_s18 }
  0x42   :  { %p1606_p11 = scmp.ne.s32.totalorder %s55_s18, %s1605_s4  ;;  %p1611_p13 = scmp.lt.s32.totalorder %s1605_s4, %s1605_s4 }
  0x44   :  { %p1612_p0 = por %p1611_p13, %p1610_p12 }
  0x46   :  { %p1613_p1 = pnand %p1612_p0, %p1606_p11 }
  0x48   :  { %1616 = shalt.err (!%p1613_p1)
}
  0x49   :  { %60 = dma.hbm_to_vmem [thread:$0]  %s2008_s3, 8192, %s55_s18, [#allocation6], %s1752_s24, %s1752_s24, %s1753_s25  }
  0x4a   :  { %s1625_s0 = scalar_lea.vmem %s79_s22, 256  ;;  %p1630_p3 = scmp.lt.s32.totalorder %s79_s22, %s79_s22 }
  0x4b   :  { %p1626_p2 = scmp.ne.s32.totalorder %s79_s22, %s1625_s0  ;;  %p1631_p4 = scmp.lt.s32.totalorder %s1625_s0, %s1625_s0 }
  0x4d   :  { %p1632_p5 = por %p1631_p4, %p1630_p3 }
  0x4f   :  { %p1633_p6 = pnand %p1632_p5, %p1626_p2 }
  0x51   :  { %1636 = shalt.err (!%p1633_p6)
}
  0x52   :  { %84 = dma.hbm_to_vmem [thread:$0]  %s2010_s5, 256, %s79_s22, [#allocation9], %s1755_s13, %s1755_s13, %s1756_s14  }
  0x53   :  { %s1764_s28 = smov [#allocation13]   ;;  %s1765_s30 = smov [#allocation16]  }
  0x54   :  { %s102_s29 = sshll.u32 %s1764_s28, 4  ;;  %s127_s3 = sshll.u32 %s1765_s30, 4  ;;  %s103_s29 = int_to_ptr.vmem [resolvable:$true] %s102_s29  ;;  %s128_s3 = int_to_ptr.vmem [resolvable:$true] %s127_s3 }
  0x55   :  { %s1645_s24 = scalar_lea.vmem %s103_s29, 6144  ;;  %p1650_p8 = scmp.lt.s32.totalorder %s103_s29, %s103_s29 }
  0x56   :  { %p1646_p7 = scmp.ne.s32.totalorder %s103_s29, %s1645_s24  ;;  %p1651_p9 = scmp.lt.s32.totalorder %s1645_s24, %s1645_s24 }
  0x58   :  { %p1652_p10 = por %p1651_p9, %p1650_p8 }
  0x5a   :  { %p1653_p11 = pnand %p1652_p10, %p1646_p7 }
  0x5c   :  { %1656 = shalt.err (!%p1653_p11)
}
  0x5d   :  { %108 = dma.hbm_to_vmem [thread:$0]  %s2012_s7, 6144, %s103_s29, [#allocation12], %s1758_s19, %s1758_s19, %s1759_s20  }
  0x5e   :  { %s1665_s5 = scalar_lea.vmem %s128_s3, 384  ;;  %p1670_p13 = scmp.lt.s32.totalorder %s128_s3, %s128_s3 }
  0x5f   :  { %p1666_p12 = scmp.ne.s32.totalorder %s128_s3, %s1665_s5  ;;  %p1671_p0 = scmp.lt.s32.totalorder %s1665_s5, %s1665_s5 }
  0x61   :  { %p1672_p1 = por %p1671_p0, %p1670_p13 }
  0x63   :  { %p1673_p2 = pnand %p1672_p1, %p1666_p12 }
  0x65   :  { %1676 = shalt.err (!%p1673_p2)
}
  0x66   :  { %130 = dma.hbm_to_vmem [thread:$0]  %s2014_s9, 384, %s128_s3, [#allocation15]  }
  0x67   :  { %1737 = dma.done.wait [#allocation3], 16  }
  0x68   :  { %1738 = vsyncadd [#allocation3], 4294967280 }
  0x69   :  { %1739 = dma.done.wait [#allocation6], 8704  }
  0x6a   :  { %1740 = vsyncadd [#allocation6], 4294958592 }
  0x6b   :  { %1741 = dma.done.wait [#allocation9], 2304  }
  0x6c   :  { %1742 = vsyncadd [#allocation9], 4294964992 }
  0x6d   :  { %1743 = dma.done.wait [#allocation12], 12288  }
  0x6e   :  { %1744 = vsyncadd [#allocation12], 4294955008 }
  0x6f   :  { %1745 = dma.done.wait [#allocation15], 2432  }
  0x70   :  { %1746 = vsyncadd [#allocation15], 4294964864  ;;  %v1766_v0 = vmov 0.0   ;;  %v190_v1 = vld [vmem:[#allocation7 + $0xf8] sm:$0xff]  ;;  %v189_v2 = vld [vmem:[#allocation7 + $0xf0] sm:$0xff]  ;;  %vm1767_vm0 = vmmov 0  }
  0x71   :  { %267 = vmatprep.mubr.f32.mxu0 %v1766_v0  ;;  %1319 = vmatprep.subr.mxu1 %v1766_v0  ;;  %v188_v3 = vld [vmem:[#allocation7 + $0xe8] sm:$0xff]  ;;  %v187_v4 = vld [vmem:[#allocation7 + $0xe0] sm:$0xff]  ;;  %v186_v5 = vld [vmem:[#allocation7 + $0xd8] sm:$0xff]  ;;  %vm603_vm1 = vcmask 1042432   ;;  %vm599_vm3 = vcmask 89088  }
  0x72   :  { %203 = vmatprep.subr.mxu0 %v190_v1  ;;  %v185_v6 = vld [vmem:[#allocation7 + $0xd0] sm:$0xff]  ;;  %v184_v7 = vld [vmem:[#allocation7 + $0xc8] sm:$0xff]  ;;  %v183_v8 = vld [vmem:[#allocation7 + $0xc0] sm:$0xff]  ;;  %1351 = vmatprep.mubr.msk.f32.mxu1 %vm1767_vm0, %v1766_v0 }
  0x73   :  { %204 = vmatpush1.msra.mxu0 %v189_v2  ;;  %v182_v9 = vld [vmem:[#allocation7 + $0xb8] sm:$0xff]  ;;  %v181_v10 = vld [vmem:[#allocation7 + $0xb0] sm:$0xff]  ;;  %v180_v11 = vld [vmem:[#allocation7 + $0xa8] sm:$0xff] }
  0x74   :  { %205 = vmatprep.subr.mxu0 %v188_v3  ;;  %v179_v12 = vld [vmem:[#allocation7 + $0xa0] sm:$0xff]  ;;  %v178_v13 = vld [vmem:[#allocation7 + $0x98] sm:$0xff]  ;;  %v177_v14 = vld [vmem:[#allocation7 + $0x90] sm:$0xff] }
  0x75   :  { %206 = vmatpush1.msra.mxu0 %v187_v4  ;;  %v176_v15 = vld [vmem:[#allocation7 + $0x88] sm:$0xff]  ;;  %v175_v16 = vld [vmem:[#allocation7 + $0x80] sm:$0xff]  ;;  %v174_v17 = vld [vmem:[#allocation7 + $0x78] sm:$0xff] }
  0x76   :  { %207 = vmatprep.subr.mxu0 %v186_v5  ;;  %v173_v18 = vld [vmem:[#allocation7 + $0x70] sm:$0xff]  ;;  %v172_v19 = vld [vmem:[#allocation7 + $0x68] sm:$0xff]  ;;  %v171_v20 = vld [vmem:[#allocation7 + $0x60] sm:$0xff] }
  0x77   :  { %208 = vmatpush1.msra.mxu0 %v185_v6  ;;  %v170_v21 = vld [vmem:[#allocation7 + $0x58] sm:$0xff]  ;;  %v169_v22 = vld [vmem:[#allocation7 + $0x50] sm:$0xff]  ;;  %v168_v23 = vld [vmem:[#allocation7 + $0x48] sm:$0xff] }
  0x78   :  { %209 = vmatprep.subr.mxu0 %v184_v7  ;;  %v167_v24 = vld [vmem:[#allocation7 + $0x40] sm:$0xff]  ;;  %v166_v25 = vld [vmem:[#allocation7 + $0x38] sm:$0xff]  ;;  %v165_v26 = vld [vmem:[#allocation7 + $0x30] sm:$0xff] }
  0x79   :  { %210 = vmatpush1.msra.mxu0 %v183_v8  ;;  %v164_v27 = vld [vmem:[#allocation7 + $0x28] sm:$0xff]  ;;  %v163_v28 = vld [vmem:[#allocation7 + $0x20] sm:$0xff]  ;;  %v162_v29 = vld [vmem:[#allocation7 + $0x18] sm:$0xff] }
  0x7a   :  { %211 = vmatprep.subr.mxu0 %v182_v9  ;;  %v161_v30 = vld [vmem:[#allocation7 + $0x10] sm:$0xff]  ;;  %v160_v31 = vld [vmem:[#allocation7 + $0x8] sm:$0xff]  ;;  %v159_v32 = vld [vmem:[#allocation7] sm:$0xff] }
  0x7b   :  { %212 = vmatpush1.msra.mxu0 %v181_v10  ;;  %v1887_v33 = vld [vmem:[#allocation2] sm:$0x1]  ;;  %v417_v35 = vld [vmem:[#allocation7 + $0x1f0] sm:$0xff]  ;;  %v416_v36 = vld [vmem:[#allocation7 + $0x1e8] sm:$0xff] }
  0x7c   :  { %213 = vmatprep.subr.mxu0 %v180_v11  ;;  %v418_v34 = vld [vmem:[#allocation7 + $0x1f8] sm:$0xff]  ;;  %v415_v37 = vld [vmem:[#allocation7 + $0x1e0] sm:$0xff]  ;;  %v413_v39 = vld [vmem:[#allocation7 + $0x1d0] sm:$0xff] }
  0x7d   :  { %214 = vmatpush1.msra.mxu0 %v179_v12  ;;  %v414_v38 = vld [vmem:[#allocation7 + $0x1d8] sm:$0xff]  ;;  %v412_v40 = vld [vmem:[#allocation7 + $0x1c8] sm:$0xff]  ;;  %v411_v41 = vld [vmem:[#allocation7 + $0x1c0] sm:$0xff] }
  0x7e   :  { %215 = vmatprep.subr.mxu0 %v178_v13  ;;  %v410_v42 = vld [vmem:[#allocation7 + $0x1b8] sm:$0xff]  ;;  %v409_v43 = vld [vmem:[#allocation7 + $0x1b0] sm:$0xff]  ;;  %v408_v44 = vld [vmem:[#allocation7 + $0x1a8] sm:$0xff] }
  0x7f   :  { %216 = vmatpush1.msra.mxu0 %v177_v14  ;;  %v407_v45 = vld [vmem:[#allocation7 + $0x1a0] sm:$0xff]  ;;  %v406_v46 = vld [vmem:[#allocation7 + $0x198] sm:$0xff]  ;;  %v405_v47 = vld [vmem:[#allocation7 + $0x190] sm:$0xff] }
  0x80   :  { %217 = vmatprep.subr.mxu0 %v176_v15  ;;  %v404_v48 = vld [vmem:[#allocation7 + $0x188] sm:$0xff]  ;;  %v403_v49 = vld [vmem:[#allocation7 + $0x180] sm:$0xff]  ;;  %v402_v50 = vld [vmem:[#allocation7 + $0x178] sm:$0xff] }
  0x81   :  { %218 = vmatpush1.msra.mxu0 %v175_v16  ;;  %v401_v51 = vld [vmem:[#allocation7 + $0x170] sm:$0xff]  ;;  %v400_v52 = vld [vmem:[#allocation7 + $0x168] sm:$0xff]  ;;  %v399_v53 = vld [vmem:[#allocation7 + $0x160] sm:$0xff] }
  0x82   :  { %219 = vmatprep.subr.mxu0 %v174_v17  ;;  %v398_v54 = vld [vmem:[#allocation7 + $0x158] sm:$0xff]  ;;  %v397_v55 = vld [vmem:[#allocation7 + $0x150] sm:$0xff]  ;;  %v396_v56 = vld [vmem:[#allocation7 + $0x148] sm:$0xff] }
  0x83   :  { %220 = vmatpush1.msra.mxu0 %v173_v18  ;;  %v395_v57 = vld [vmem:[#allocation7 + $0x140] sm:$0xff]  ;;  %v394_v58 = vld [vmem:[#allocation7 + $0x138] sm:$0xff]  ;;  %v393_v59 = vld [vmem:[#allocation7 + $0x130] sm:$0xff] }
  0x84   :  { %221 = vmatprep.subr.mxu0 %v172_v19  ;;  %v392_v60 = vld [vmem:[#allocation7 + $0x128] sm:$0xff]  ;;  %v391_v61 = vld [vmem:[#allocation7 + $0x120] sm:$0xff]  ;;  %v390_v62 = vld [vmem:[#allocation7 + $0x118] sm:$0xff] }
  0x85   :  { %222 = vmatpush1.msra.mxu0 %v171_v20  ;;  %v389_v63 = vld [vmem:[#allocation7 + $0x110] sm:$0xff]  ;;  %v388_v1 = vld [vmem:[#allocation7 + $0x108] sm:$0xff]  ;;  %v387_v2 = vld [vmem:[#allocation7 + $0x100] sm:$0xff] }
  0x86   :  { %223 = vmatprep.subr.mxu0 %v170_v21  ;;  %v1894_v3 = vld [vmem:[%s2006_s1] sm:$0x1]  ;;  %v514_v4 = vld [vmem:[#allocation5 + $0x18] sm:$0x7]  ;;  %v513_v5 = vld [vmem:[#allocation5 + $0x10] sm:$0x7] }
  0x87   :  { %224 = vmatpush1.msra.mxu0 %v169_v22  ;;  %v512_v6 = vld [vmem:[#allocation5 + $0x8] sm:$0xff]  ;;  %v511_v7 = vld [vmem:[#allocation5] sm:$0xff]  ;;  %v312_v8 = vld [vmem:[#allocation8 + $0x78] sm:$0xff]  ;;  %s1769_s1 = smov [#allocation18]  }
  0x88   :  { %225 = vmatprep.subr.mxu0 %v168_v23  ;;  %v311_v9 = vld [vmem:[#allocation8 + $0x70] sm:$0xff]  ;;  %1320 = vmatpush3.msra.mxu1 %v312_v8  ;;  %v310_v10 = vld [vmem:[#allocation8 + $0x68] sm:$0xff]  ;;  %v309_v11 = vld [vmem:[#allocation8 + $0x60] sm:$0xff]  ;;  %s1216_s19 = sshll.u32 %s1769_s1, 4  ;;  %s1217_s19 = int_to_ptr.vmem [resolvable:$true] %s1216_s19 }
  0x89   :  { %226 = vmatpush1.msra.mxu0 %v167_v24  ;;  %1321 = vmatprep.subr.mxu1 %v1766_v0  ;;  %v308_v12 = vld [vmem:[#allocation8 + $0x58] sm:$0xff]  ;;  %v307_v13 = vld [vmem:[#allocation8 + $0x50] sm:$0xff]  ;;  %v306_v14 = vld [vmem:[#allocation8 + $0x48] sm:$0xff]  ;;  %s1677_s20 = scalar_lea.vmem %s1217_s19, 16  ;;  %s1681_s15 = scalar_lea.vmem %s1217_s19, 32 }
  0x8a   :  { %227 = vmatprep.subr.mxu0 %v166_v25  ;;  %1322 = vmatpush3.msra.mxu1 %v311_v9  ;;  %v305_v15 = vld [vmem:[#allocation8 + $0x40] sm:$0xff]  ;;  %v304_v16 = vld [vmem:[#allocation8 + $0x38] sm:$0xff]  ;;  %v303_v17 = vld [vmem:[#allocation8 + $0x30] sm:$0xff]  ;;  %p1678_p3 = scmp.ne.s32.totalorder %s1217_s19, %s1677_s20  ;;  %p1682_p4 = scmp.lt.s32.totalorder %s1217_s19, %s1217_s19 }
  0x8b   :  { %228 = vmatpush1.msra.mxu0 %v165_v26  ;;  %1323 = vmatprep.subr.mxu1 %v1766_v0  ;;  %v302_v18 = vld [vmem:[#allocation8 + $0x28] sm:$0xff]  ;;  %v301_v19 = vld [vmem:[#allocation8 + $0x20] sm:$0xff]  ;;  %v300_v20 = vld [vmem:[#allocation8 + $0x18] sm:$0xff]  ;;  %v193_v26 = vlaneseq  ;;  %p1683_p5 = scmp.lt.s32.totalorder %s1681_s15, %s1677_s20 }
  0x8c   :  { %229 = vmatprep.subr.mxu0 %v164_v27  ;;  %1324 = vmatpush3.msra.mxu1 %v310_v10  ;;  %v299_v21 = vld [vmem:[#allocation8 + $0x10] sm:$0xff]  ;;  %v298_v22 = vld [vmem:[#allocation8 + $0x8] sm:$0xff]  ;;  %v297_v23 = vld [vmem:[#allocation8] sm:$0xff] }
  0x8d   :  { %230 = vmatpush1.msra.mxu0 %v163_v28  ;;  %1325 = vmatprep.subr.mxu1 %v1766_v0  ;;  %v598_v24 = vld [vmem:[#allocation10 + $0x8] sm:$0x7]  ;;  %v597_v25 = vld [vmem:[#allocation10] sm:$0xff]  ;;  %v1920_v27 = vshrl.u32 %v193_v26, 7  ;;  %vm294_vm2 = vcmp.lt.s32.totalorder %v193_v26, 256  ;;  %v724_v10 = vld [vmem:[#allocation11 + $0x168] sm:$0xff]  ;;  %p1684_p6 = por %p1683_p5, %p1682_p4 }
  0x8e   :  { %231 = vmatprep.subr.mxu0 %v162_v29  ;;  %1326 = vmatpush3.msra.mxu1 %v309_v11  ;;  %v191_v29 = vld [vmem:[#allocation16] ss:$8 sm:$0x3] }
  0x8f   :  { %232 = vmatpush1.msra.mxu0 %v161_v30  ;;  %1327 = vmatprep.subr.mxu1 %v1766_v0  ;;  %v1923_v28 = vsub.s32 0, %v1920_v27  ;;  %v1926_v30 = vsub.s32 1, %v1920_v27  ;;  %v703_v26 = vld [vmem:[#allocation11 + $0xc0] sm:$0xff]  ;;  %p1685_p7 = pnand %p1684_p6, %p1678_p3 }
  0x90   :  { %233 = vmatprep.subr.mxu0 %v160_v31  ;;  %1328 = vmatpush3.msra.mxu1 %v308_v12  ;;  %v1768_v31 = vmov 1966171168   ;;  %v722_v12 = vld [vmem:[#allocation11 + $0x158] sm:$0xff] }
  0x91   :  { %234 = vmatpush1.msra.mxu0 %v159_v32  ;;  %1329 = vmatprep.subr.mxu1 %v1766_v0  ;;  %v278_v32 = vunpack.c.l.s4 %v1768_v31  ;;  %v700_v31 = vld [vmem:[#allocation11 + $0xa8] sm:$0xff] }
  0x92   :  { %268 = vmatmul.mubr.f32.vlgmr.msra.gmra.mxu0 %v1887_v33  ;;  %419 = vmatprep.subr.mxu0 %v418_v34  ;;  %v200_v34 = vrot.slane %v191_v29, %v1926_v30 }
  0x93   :  { %420 = vmatpush1.msra.mxu0 %v417_v35  ;;  %483 = vmatprep.mubr.f32.mxu0 %v1766_v0  ;;  %v279_v35 = vunpack.c.0.s8 %v278_v32  ;;  %v698_v32 = vld [vmem:[#allocation11 + $0x98] sm:$0xff] }
  0x94   :  { %421 = vmatprep.subr.mxu0 %v416_v36  ;;  %1330 = vmatpush3.msra.mxu1 %v307_v13  ;;  %v721_v13 = vld [vmem:[#allocation11 + $0x150] sm:$0xff] }
  0x95   :  { %422 = vmatpush1.msra.mxu0 %v415_v37  ;;  %1331 = vmatprep.subr.mxu1 %v1766_v0 }
  0x96   :  { %423 = vmatprep.subr.mxu0 %v414_v38  ;;  %1332 = vmatpush3.msra.mxu1 %v306_v14 }
  0x97   :  { %424 = vmatpush1.msra.mxu0 %v413_v39  ;;  %1333 = vmatprep.subr.mxu1 %v1766_v0 }
  0x98   :  { %425 = vmatprep.subr.mxu0 %v412_v40  ;;  %1334 = vmatpush3.msra.mxu1 %v305_v15  ;;  %v282_v40 = vsub.s32 %v279_v35, %v1920_v27  ;;  %v719_v15 = vld [vmem:[#allocation11 + $0x140] sm:$0xff]  ;;  %v694_v35 = vld [vmem:[#allocation11 + $0x78] sm:$0xff] }
  0x99   :  { %426 = vmatpush1.msra.mxu0 %v411_v41  ;;  %1335 = vmatprep.subr.mxu1 %v1766_v0 }
  0x9a   :  { %427 = vmatprep.subr.mxu0 %v410_v42  ;;  %1336 = vmatpush3.msra.mxu1 %v304_v16  ;;  %v718_v16 = vld [vmem:[#allocation11 + $0x138] sm:$0xff] }
  0x9b   :  { %428 = vmatpush1.msra.mxu0 %v409_v43  ;;  %1337 = vmatprep.subr.mxu1 %v1766_v0 }
  0x9c   :  { %429 = vmatprep.subr.mxu0 %v408_v44  ;;  %1338 = vmatpush3.msra.mxu1 %v303_v17  ;;  %v716_v17 = vld [vmem:[#allocation11 + $0x128] sm:$0xff] }
  0x9d   :  { %430 = vmatpush1.msra.mxu0 %v407_v45  ;;  %1339 = vmatprep.subr.mxu1 %v1766_v0 }
  0x9e   :  { %431 = vmatprep.subr.mxu0 %v406_v46  ;;  %1340 = vmatpush3.msra.mxu1 %v302_v18  ;;  %v715_v18 = vld [vmem:[#allocation11 + $0x120] sm:$0xff] }
  0x9f   :  { %432 = vmatpush1.msra.mxu0 %v405_v47  ;;  %1341 = vmatprep.subr.mxu1 %v1766_v0 }
  0xa0   :  { %433 = vmatprep.subr.mxu0 %v404_v48  ;;  %1342 = vmatpush3.msra.mxu1 %v301_v19  ;;  %v713_v19 = vld [vmem:[#allocation11 + $0x110] sm:$0xff] }
  0xa1   :  { %434 = vmatpush1.msra.mxu0 %v403_v49  ;;  %1343 = vmatprep.subr.mxu1 %v1766_v0 }
  0xa2   :  { %435 = vmatprep.subr.mxu0 %v402_v50  ;;  %1344 = vmatpush3.msra.mxu1 %v300_v20  ;;  %v712_v20 = vld [vmem:[#allocation11 + $0x108] sm:$0xff] }
  0xa3   :  { %436 = vmatpush1.msra.mxu0 %v401_v51  ;;  %1345 = vmatprep.subr.mxu1 %v1766_v0 }
  0xa4   :  { %437 = vmatprep.subr.mxu0 %v400_v52  ;;  %1346 = vmatpush3.msra.mxu1 %v299_v21  ;;  %v710_v21 = vld [vmem:[#allocation11 + $0xf8] sm:$0xff] }
  0xa5   :  { %438 = vmatpush1.msra.mxu0 %v399_v53  ;;  %1347 = vmatprep.subr.mxu1 %v1766_v0 }
  0xa6   :  { %439 = vmatprep.subr.mxu0 %v398_v54  ;;  %1348 = vmatpush3.msra.mxu1 %v298_v22  ;;  %v725_v54 = vld [vmem:[#allocation11 + $0x170] sm:$0xff] }
  0xa7   :  { %440 = vmatpush1.msra.mxu0 %v397_v55  ;;  %1349 = vmatprep.subr.mxu1 %v1766_v0  ;;  %v726_v55 = vld [vmem:[#allocation11 + $0x178] sm:$0xff]  ;;  %v709_v22 = vld [vmem:[#allocation11 + $0xf0] sm:$0xff] }
  0xa8   :  { %441 = vmatprep.subr.mxu0 %v396_v56  ;;  %1350 = vmatpush3.msra.mxu1 %v297_v23  ;;  %v723_v56 = vld [vmem:[#allocation11 + $0x160] sm:$0xff] }
  0xa9   :  { %442 = vmatpush1.msra.mxu0 %v395_v57  ;;  %1352 = vmatmul.mubr.f32.vlgmr.msra.gmra.mxu1 %v1887_v33  ;;  %v196_v33 = vrot.slane %v191_v29, %v1923_v28  ;;  %v720_v57 = vld [vmem:[#allocation11 + $0x148] sm:$0xff]  ;;  %v707_v23 = vld [vmem:[#allocation11 + $0xe0] sm:$0xff]  ;;  %v701_v29 = vld [vmem:[#allocation11 + $0xb0] sm:$0xff] }
  0xaa   :  { %443 = vmatprep.subr.mxu0 %v394_v58  ;;  %1354 = vmatprep.subr.mxu1 %v1766_v0  ;;  %v717_v58 = vld [vmem:[#allocation11 + $0x130] sm:$0xff] }
  0xab   :  { %444 = vmatpush1.msra.mxu0 %v393_v59  ;;  %1355 = vmatpush3.msk.msra.mxu1 %vm603_vm1, %v598_v24  ;;  %v714_v59 = vld [vmem:[#allocation11 + $0x118] sm:$0xff] }
  0xac   :  { %445 = vmatprep.subr.mxu0 %v392_v60  ;;  %1358 = vmatprep.mubr.msk.f32.mxu1 %vm1767_vm0, %v1766_v0  ;;  %v711_v60 = vld [vmem:[#allocation11 + $0x100] sm:$0xff]  ;;  %v706_v24 = vld [vmem:[#allocation11 + $0xd8] sm:$0xff] }
  0xad   :  { %446 = vmatpush1.msra.mxu0 %v391_v61  ;;  %1356 = vmatprep.subr.mxu1 %v1766_v0  ;;  %v708_v61 = vld [vmem:[#allocation11 + $0xe8] sm:$0xff] }
  0xae   :  { %447 = vmatprep.subr.mxu0 %v390_v62  ;;  %1357 = vmatpush3.msra.mxu1 %v597_v25  ;;  %v705_v62 = vld [vmem:[#allocation11 + $0xd0] sm:$0xff]  ;;  %v704_v25 = vld [vmem:[#allocation11 + $0xc8] sm:$0xff] }
  0xaf   :  { %448 = vmatpush1.msra.mxu0 %v389_v63  ;;  %745 = vmatprep.subr.mxu1 %v725_v54  ;;  %v702_v63 = vld [vmem:[#allocation11 + $0xb8] sm:$0xff] }
  0xb0   :  { %449 = vmatprep.subr.mxu0 %v388_v1  ;;  %v699_v1 = vld [vmem:[#allocation11 + $0xa0] sm:$0xff] }
  0xb1   :  { %450 = vmatpush1.msra.mxu0 %v387_v2  ;;  %v696_v2 = vld [vmem:[#allocation11 + $0x88] sm:$0xff] }
  0xb2   :  { %484 = vmatmul.mubr.f32.vlgmr.msra.gmra.mxu0 %v1894_v3  ;;  %554 = vmatprep.subr.mxu0 %v514_v4  ;;  %v693_v4 = vld [vmem:[#allocation11 + $0x70] sm:$0xff] }
  0xb3   :  { %555 = vmatpush1.xpose.msra.mxu0 %v513_v5  ;;  %v690_v5 = vld [vmem:[#allocation11 + $0x58] sm:$0xff] }
  0xb4   :  { %556 = vmatprep.subr.mxu0 %v512_v6  ;;  %v313_v6 = vld [vmem:[#allocation16 + $0x1] ss:$0 sm:$0xff] }
  0xb7   :  { %557 = vmatpush1.xpose.msra.mxu0 %v511_v7 }
  0xb8   :  { %1361 = vmatprep.subr.mxu0 %v1766_v0 }
 0x152   :  { %v269_v36 = vpop.f32.mrf.mxu0 }
 0x153   :  { %v270_v37 = vadd.f32 %v269_v36, %v196_v33  ;;  %v697_v33 = vld [vmem:[#allocation11 + $0x90] sm:$0xff]  ;;  %v692_v36 = vld [vmem:[#allocation11 + $0x68] sm:$0xff] }
 0x154   :  { %v271_v38 = vpop.f32.mrf.mxu0 }
 0x155   :  { %v272_v39 = vadd.f32 %v271_v38, %v200_v34  ;;  %v695_v34 = vld [vmem:[#allocation11 + $0x80] sm:$0xff]  ;;  %v689_v38 = vld [vmem:[#allocation11 + $0x50] sm:$0xff] }
 0x157   :  { %v276_v41 = vcombine.low %v270_v37, %v272_v39  ;;  %v691_v37 = vld [vmem:[#allocation11 + $0x60] sm:$0xff]  ;;  %v688_v39 = vld [vmem:[#allocation11 + $0x48] sm:$0xff] }
 0x159   :  { %v283_v42 = vrot.slane %v276_v41, %v282_v40  ;;  %v685_v41 = vld [vmem:[#allocation11 + $0x30] sm:$0xff] }
 0x15b   :  { %v290_v43 = vrot.slane %v283_v42, %v282_v40  ;;  %v683_v42 = vld [vmem:[#allocation11 + $0x20] sm:$0xff] }
 0x15d   :  { %296 = vst.msk [vmem:[#allocation20] sm:$0x3] %vm294_vm2, %v290_v43  ;;  %v687_v43 = vld [vmem:[#allocation11 + $0x40] sm:$0xff] }
 0x164   :  { %v386_v49 = vld [vmem:[#allocation20] sm:$0x3] }
 0x169   :  { %v380_v7 = vpop.f32.mrf.mxu1 }
 0x16a   :  { %v381_v8 = vadd.f32 %v380_v7, %v313_v6  ;;  %v921_v6 = vld [vmem:[#allocation13 + $0x118] sm:$0xff] }
 0x16b   :  { %v1353_v9 = vpop.f32.mrf.mxu1  ;;  %v917_v7 = vld [vmem:[#allocation13 + $0xf8] sm:$0xff] }
 0x16c   :  { %384 = vst [vmem:[#allocation17] sm:$0x1] %v381_v8  ;;  %v916_v8 = vld [vmem:[#allocation13 + $0xf0] sm:$0xff]  ;;  %v914_v9 = vld [vmem:[#allocation13 + $0xe0] sm:$0xff] }
 0x172   :  { %v485_v44 = vpop.f32.mrf.mxu0 }
 0x174   :  { %v487_v45 = vpop.f32.mrf.mxu0 }
 0x175   :  { %v492_v46 = vcombine.low %v485_v44, %v487_v45  ;;  %v682_v44 = vld [vmem:[#allocation11 + $0x18] sm:$0xff]  ;;  %v680_v45 = vld [vmem:[#allocation11 + $0x8] sm:$0xff] }
 0x177   :  { %v499_v47 = vrot.slane %v492_v46, %v282_v40  ;;  %v684_v46 = vld [vmem:[#allocation11 + $0x28] sm:$0xff] }
 0x179   :  { %v506_v48 = vrot.slane %v499_v47, %v282_v40  ;;  %v686_v40 = vld [vmem:[#allocation11 + $0x38] sm:$0xff]  ;;  %v679_v47 = vld [vmem:[#allocation11] sm:$0xff] }
 0x17b   :  { %v508_v50 = vadd.f32 %v506_v48, %v386_v49  ;;  %v681_v48 = vld [vmem:[#allocation11 + $0x10] sm:$0xff] }
 0x17c   :  { %v932_v49 = vld [vmem:[#allocation13 + $0x170] sm:$0xff] }
 0x17d   :  { %1487 = vtanh.f32 %v508_v50  ;;  %v596_v50 = vld [vmem:[#allocation17] sm:$0x1] }
 0x18a   :  { %v1488_v51 = vpop.eup %1487 }
 0x18b   :  { %510 = vst.msk [vmem:[#allocation20] sm:$0x3] %vm294_vm2, %v1488_v51  ;;  %v523_v52 = vrot.slane %v1488_v51, %v1926_v30  ;;  %v519_v53 = vrot.slane %v1488_v51, %v1923_v28 }
 0x18d   :  { %590 = vmatprep.mubr.f32.mxu0 %v523_v52 }
 0x18e   :  { %591 = vmatmul.mubr.f32.vlgmr.msra.gmra.mxu0 %v519_v53 }
 0x18f   :  { %1393 = vmatprep.mubr.msk.f32.mxu0 %vm1767_vm0, %v1766_v0  ;;  %1362 = vmatpush3.msra.mxu0 %v726_v55  ;;  %v931_v55 = vld [vmem:[#allocation13 + $0x168] sm:$0xff] }
 0x190   :  { %1363 = vmatprep.subr.mxu0 %v1766_v0 }
 0x191   :  { %1364 = vmatpush3.msra.mxu0 %v723_v56  ;;  %v933_v56 = vld [vmem:[#allocation13 + $0x178] sm:$0xff] }
 0x192   :  { %1365 = vmatprep.subr.mxu0 %v1766_v0 }
 0x193   :  { %1366 = vmatpush3.msra.mxu0 %v720_v57  ;;  %v929_v57 = vld [vmem:[#allocation13 + $0x158] sm:$0xff] }
 0x194   :  { %1367 = vmatprep.subr.mxu0 %v1766_v0 }
 0x195   :  { %1368 = vmatpush3.msra.mxu0 %v717_v58  ;;  %v928_v58 = vld [vmem:[#allocation13 + $0x150] sm:$0xff] }
 0x196   :  { %1369 = vmatprep.subr.mxu0 %v1766_v0 }
 0x197   :  { %1370 = vmatpush3.msra.mxu0 %v714_v59  ;;  %v930_v59 = vld [vmem:[#allocation13 + $0x160] sm:$0xff] }
 0x198   :  { %1371 = vmatprep.subr.mxu0 %v1766_v0 }
 0x199   :  { %1372 = vmatpush3.msra.mxu0 %v711_v60  ;;  %v926_v60 = vld [vmem:[#allocation13 + $0x140] sm:$0xff] }
 0x19a   :  { %1373 = vmatprep.subr.mxu0 %v1766_v0 }
 0x19b   :  { %1374 = vmatpush3.msra.mxu0 %v708_v61  ;;  %v925_v61 = vld [vmem:[#allocation13 + $0x138] sm:$0xff] }
 0x19c   :  { %1375 = vmatprep.subr.mxu0 %v1766_v0 }
 0x19d   :  { %1376 = vmatpush3.msra.mxu0 %v705_v62  ;;  %v927_v62 = vld [vmem:[#allocation13 + $0x148] sm:$0xff] }
 0x19e   :  { %1377 = vmatprep.subr.mxu0 %v1766_v0 }
 0x19f   :  { %1378 = vmatpush3.msra.mxu0 %v702_v63  ;;  %v923_v63 = vld [vmem:[#allocation13 + $0x128] sm:$0xff] }
 0x1a0   :  { %1379 = vmatprep.subr.mxu0 %v1766_v0 }
 0x1a1   :  { %1380 = vmatpush3.msra.mxu0 %v699_v1  ;;  %v922_v1 = vld [vmem:[#allocation13 + $0x120] sm:$0xff] }
 0x1a2   :  { %1381 = vmatprep.subr.mxu0 %v1766_v0 }
 0x1a3   :  { %1382 = vmatpush3.msra.mxu0 %v696_v2  ;;  %v924_v2 = vld [vmem:[#allocation13 + $0x130] sm:$0xff] }
 0x1a4   :  { %1383 = vmatprep.subr.mxu0 %v1766_v0 }
 0x1a5   :  { %1384 = vmatpush3.msra.mxu0 %v693_v4  ;;  %v920_v4 = vld [vmem:[#allocation13 + $0x110] sm:$0xff] }
 0x1a6   :  { %1385 = vmatprep.subr.mxu0 %v1766_v0 }
 0x1a7   :  { %1386 = vmatpush3.msra.mxu0 %v690_v5  ;;  %v919_v5 = vld [vmem:[#allocation13 + $0x108] sm:$0xff] }
 0x1a8   :  { %1387 = vmatprep.subr.mxu0 %v1766_v0 }
 0x1a9   :  { %1388 = vmatpush3.msra.mxu0 %v687_v43  ;;  %v1125_v43 = vld [vmem:[#allocation14 + $0x78] sm:$0xff] }
 0x1aa   :  { %1389 = vmatprep.subr.mxu0 %v1766_v0 }
 0x1ab   :  { %1390 = vmatpush3.msra.mxu0 %v684_v46  ;;  %v1122_v46 = vld [vmem:[#allocation14 + $0x60] sm:$0xff] }
 0x1ac   :  { %1391 = vmatprep.subr.mxu0 %v1766_v0 }
 0x1ad   :  { %1392 = vmatpush3.msra.mxu0 %v681_v48  ;;  %v1120_v48 = vld [vmem:[#allocation14 + $0x50] sm:$0xff] }
 0x1ae   :  { %1396 = vmatprep.subr.mxu0 %v1766_v0 }
 0x24e   :  { %v592_v11 = vpop.f32.mrf.mxu0 }
 0x24f   :  { %1359 = vmatmul.mubr.msk.f32.vlgmr.msra.gmra.mxu1 %vm599_vm3, %v592_v11  ;;  %v913_v11 = vld [vmem:[#allocation13 + $0xd8] sm:$0xff] }
 0x250   :  { %v594_v14 = vpop.f32.mrf.mxu0  ;;  %746 = vmatpush1.msra.mxu1 %v724_v10  ;;  %809 = vmatprep.mubr.f32.mxu1 %v1766_v0  ;;  %v918_v10 = vld [vmem:[#allocation13 + $0x100] sm:$0xff] }
 0x251   :  { %747 = vmatprep.subr.mxu1 %v722_v12  ;;  %v911_v12 = vld [vmem:[#allocation13 + $0xc8] sm:$0xff]  ;;  %v910_v14 = vld [vmem:[#allocation13 + $0xc0] sm:$0xff] }
 0x252   :  { %748 = vmatpush1.msra.mxu1 %v721_v13  ;;  %v915_v13 = vld [vmem:[#allocation13 + $0xe8] sm:$0xff] }
 0x253   :  { %749 = vmatprep.subr.mxu1 %v719_v15  ;;  %v908_v15 = vld [vmem:[#allocation13 + $0xb0] sm:$0xff] }
 0x254   :  { %750 = vmatpush1.msra.mxu1 %v718_v16  ;;  %v912_v16 = vld [vmem:[#allocation13 + $0xd0] sm:$0xff] }
 0x255   :  { %751 = vmatprep.subr.mxu1 %v716_v17  ;;  %v907_v17 = vld [vmem:[#allocation13 + $0xa8] sm:$0xff] }
 0x256   :  { %752 = vmatpush1.msra.mxu1 %v715_v18  ;;  %v905_v18 = vld [vmem:[#allocation13 + $0x98] sm:$0xff] }
 0x257   :  { %753 = vmatprep.subr.mxu1 %v713_v19  ;;  %v909_v19 = vld [vmem:[#allocation13 + $0xb8] sm:$0xff] }
 0x258   :  { %754 = vmatpush1.msra.mxu1 %v712_v20  ;;  %v904_v20 = vld [vmem:[#allocation13 + $0x90] sm:$0xff] }
 0x259   :  { %755 = vmatprep.subr.mxu1 %v710_v21  ;;  %v902_v21 = vld [vmem:[#allocation13 + $0x80] sm:$0xff] }
 0x25a   :  { %756 = vmatpush1.msra.mxu1 %v709_v22  ;;  %v906_v22 = vld [vmem:[#allocation13 + $0xa0] sm:$0xff] }
 0x25b   :  { %757 = vmatprep.subr.mxu1 %v707_v23  ;;  %v901_v23 = vld [vmem:[#allocation13 + $0x78] sm:$0xff] }
 0x25c   :  { %758 = vmatpush1.msra.mxu1 %v706_v24  ;;  %v899_v24 = vld [vmem:[#allocation13 + $0x68] sm:$0xff] }
 0x25d   :  { %759 = vmatprep.subr.mxu1 %v704_v25  ;;  %v903_v25 = vld [vmem:[#allocation13 + $0x88] sm:$0xff] }
 0x25e   :  { %760 = vmatpush1.msra.mxu1 %v703_v26  ;;  %v898_v26 = vld [vmem:[#allocation13 + $0x60] sm:$0xff] }
 0x25f   :  { %761 = vmatprep.subr.mxu1 %v701_v29  ;;  %v896_v29 = vld [vmem:[#allocation13 + $0x50] sm:$0xff] }
 0x260   :  { %762 = vmatpush1.msra.mxu1 %v700_v31  ;;  %v900_v31 = vld [vmem:[#allocation13 + $0x70] sm:$0xff] }
 0x261   :  { %763 = vmatprep.subr.mxu1 %v698_v32  ;;  %v895_v32 = vld [vmem:[#allocation13 + $0x48] sm:$0xff] }
 0x262   :  { %764 = vmatpush1.msra.mxu1 %v697_v33  ;;  %v893_v33 = vld [vmem:[#allocation13 + $0x38] sm:$0xff] }
 0x263   :  { %765 = vmatprep.subr.mxu1 %v695_v34  ;;  %v897_v34 = vld [vmem:[#allocation13 + $0x58] sm:$0xff] }
 0x264   :  { %766 = vmatpush1.msra.mxu1 %v694_v35  ;;  %v892_v35 = vld [vmem:[#allocation13 + $0x30] sm:$0xff] }
 0x265   :  { %767 = vmatprep.subr.mxu1 %v692_v36  ;;  %v890_v36 = vld [vmem:[#allocation13 + $0x20] sm:$0xff] }
 0x266   :  { %768 = vmatpush1.msra.mxu1 %v691_v37  ;;  %v894_v37 = vld [vmem:[#allocation13 + $0x40] sm:$0xff] }
 0x267   :  { %769 = vmatprep.subr.mxu1 %v689_v38  ;;  %v889_v38 = vld [vmem:[#allocation13 + $0x18] sm:$0xff] }
 0x268   :  { %770 = vmatpush1.msra.mxu1 %v688_v39  ;;  %v887_v39 = vld [vmem:[#allocation13 + $0x8] sm:$0xff] }
 0x269   :  { %771 = vmatprep.subr.mxu1 %v686_v40  ;;  %v891_v40 = vld [vmem:[#allocation13 + $0x28] sm:$0xff] }
 0x26a   :  { %772 = vmatpush1.msra.mxu1 %v685_v41  ;;  %v886_v41 = vld [vmem:[#allocation13] sm:$0xff] }
 0x26b   :  { %773 = vmatprep.subr.mxu1 %v683_v42  ;;  %v888_v42 = vld [vmem:[#allocation13 + $0x10] sm:$0xff] }
 0x26c   :  { %774 = vmatpush1.msra.mxu1 %v682_v44  ;;  %v1124_v44 = vld [vmem:[#allocation14 + $0x70] sm:$0xff] }
 0x26d   :  { %775 = vmatprep.subr.mxu1 %v680_v45  ;;  %v1123_v45 = vld [vmem:[#allocation14 + $0x68] sm:$0xff] }
 0x26e   :  { %776 = vmatpush1.msra.mxu1 %v679_v47  ;;  %v1121_v47 = vld [vmem:[#allocation14 + $0x58] sm:$0xff] }
 0x26f   :  { %952 = vmatprep.subr.mxu1 %v932_v49  ;;  %v1119_v49 = vld [vmem:[#allocation14 + $0x48] sm:$0xff] }
 0x30f   :  { %v673_v51 = vpop.f32.mrf.mxu1 }
 0x310   :  { %v677_v52 = vadd.f32 %v673_v51, %v596_v50  ;;  %v1118_v50 = vld [vmem:[#allocation14 + $0x40] sm:$0xff]  ;;  %v1117_v51 = vld [vmem:[#allocation14 + $0x38] sm:$0xff] }
 0x311   :  { %v1360_v53 = vpop.f32.mrf.mxu1 }
 0x312   :  { %v678_v54 = vmax.f32 %v677_v52, 0.0  ;;  %v1116_v52 = vld [vmem:[#allocation14 + $0x30] sm:$0xff]  ;;  %v1115_v53 = vld [vmem:[#allocation14 + $0x28] sm:$0xff] }
 0x314   :  { %810 = vmatmul.mubr.f32.vlgmr.msra.gmra.mxu1 %v678_v54  ;;  %1394 = vmatmul.mubr.f32.vlgmr.msra.gmra.mxu0 %v678_v54  ;;  %v1114_v54 = vld [vmem:[#allocation14 + $0x20] sm:$0xff] }
 0x315   :  { %953 = vmatpush1.msra.mxu1 %v931_v55  ;;  %1397 = vmatpush3.msra.mxu0 %v933_v56  ;;  %v1113_v55 = vld [vmem:[#allocation14 + $0x18] sm:$0xff]  ;;  %v1112_v56 = vld [vmem:[#allocation14 + $0x10] sm:$0xff] }
 0x316   :  { %954 = vmatprep.subr.mxu1 %v929_v57  ;;  %1398 = vmatprep.subr.mxu0 %v1766_v0  ;;  %v1111_v57 = vld [vmem:[#allocation14 + $0x8] sm:$0xff] }
 0x317   :  { %955 = vmatpush1.msra.mxu1 %v928_v58  ;;  %1399 = vmatpush3.msra.mxu0 %v930_v59  ;;  %v1110_v58 = vld [vmem:[#allocation14] sm:$0xff] }
 0x318   :  { %956 = vmatprep.subr.mxu1 %v926_v60  ;;  %1400 = vmatprep.subr.mxu0 %v1766_v0 }
 0x319   :  { %957 = vmatpush1.msra.mxu1 %v925_v61  ;;  %1401 = vmatpush3.msra.mxu0 %v927_v62  ;;  %v728_v61 = vld [vmem:[#allocation16 + $0x2] ss:$8 sm:$0x7] }
 0x31a   :  { %958 = vmatprep.subr.mxu1 %v923_v63  ;;  %1402 = vmatprep.subr.mxu0 %v1766_v0  ;;  %v935_v63 = vld [vmem:[#allocation16 + $0x3] ss:$8 sm:$0x7] }
 0x31b   :  { %959 = vmatpush1.msra.mxu1 %v922_v1  ;;  %1403 = vmatpush3.msra.mxu0 %v924_v2  ;;  %v733_v1 = vrot.slane %v728_v61, %v1923_v28  ;;  %v940_v2 = vrot.slane %v935_v63, %v1923_v28  ;;  %v740_v28 = vsub.s32 2, %v1920_v27 }
 0x31c   :  { %960 = vmatprep.subr.mxu1 %v920_v4  ;;  %1404 = vmatprep.subr.mxu0 %v1766_v0 }
 0x31d   :  { %961 = vmatpush1.msra.mxu1 %v919_v5  ;;  %1405 = vmatpush3.msra.mxu0 %v921_v6 }
 0x31e   :  { %962 = vmatprep.subr.mxu1 %v917_v7  ;;  %1406 = vmatprep.subr.mxu0 %v1766_v0 }
 0x31f   :  { %963 = vmatpush1.msra.mxu1 %v916_v8  ;;  %1016 = vmatprep.mubr.f32.mxu1 %v1766_v0  ;;  %v944_v8 = vrot.slane %v935_v63, %v1926_v30 }
 0x320   :  { %964 = vmatprep.subr.mxu1 %v914_v9  ;;  %1407 = vmatpush3.msra.mxu0 %v918_v10 }
 0x321   :  { %965 = vmatpush1.msra.mxu1 %v913_v11  ;;  %1408 = vmatprep.subr.mxu0 %v1766_v0 }
 0x322   :  { %966 = vmatprep.subr.mxu1 %v911_v12  ;;  %1409 = vmatpush3.msra.mxu0 %v915_v13 }
 0x323   :  { %967 = vmatpush1.msra.mxu1 %v910_v14  ;;  %1410 = vmatprep.subr.mxu0 %v1766_v0 }
 0x324   :  { %968 = vmatprep.subr.mxu1 %v908_v15  ;;  %1411 = vmatpush3.msra.mxu0 %v912_v16 }
 0x325   :  { %969 = vmatpush1.msra.mxu1 %v907_v17  ;;  %1412 = vmatprep.subr.mxu0 %v1766_v0 }
 0x326   :  { %970 = vmatprep.subr.mxu1 %v905_v18  ;;  %1413 = vmatpush3.msra.mxu0 %v909_v19  ;;  %v948_v18 = vrot.slane %v935_v63, %v740_v28 }
 0x327   :  { %971 = vmatpush1.msra.mxu1 %v904_v20  ;;  %1414 = vmatprep.subr.mxu0 %v1766_v0  ;;  %v741_v20 = vrot.slane %v728_v61, %v740_v28 }
 0x328   :  { %972 = vmatprep.subr.mxu1 %v902_v21  ;;  %1415 = vmatpush3.msra.mxu0 %v906_v22 }
 0x329   :  { %973 = vmatpush1.msra.mxu1 %v901_v23  ;;  %1416 = vmatprep.subr.mxu0 %v1766_v0 }
 0x32a   :  { %974 = vmatprep.subr.mxu1 %v899_v24  ;;  %1417 = vmatpush3.msra.mxu0 %v903_v25 }
 0x32b   :  { %975 = vmatpush1.msra.mxu1 %v898_v26  ;;  %1418 = vmatprep.subr.mxu0 %v1766_v0 }
 0x32c   :  { %976 = vmatprep.subr.mxu1 %v896_v29  ;;  %1419 = vmatpush3.msra.mxu0 %v900_v31 }
 0x32d   :  { %977 = vmatpush1.msra.mxu1 %v895_v32  ;;  %1420 = vmatprep.subr.mxu0 %v1766_v0 }
 0x32e   :  { %978 = vmatprep.subr.mxu1 %v893_v33  ;;  %1421 = vmatpush3.msra.mxu0 %v897_v34 }
 0x32f   :  { %979 = vmatpush1.msra.mxu1 %v892_v35  ;;  %1422 = vmatprep.subr.mxu0 %v1766_v0 }
 0x330   :  { %980 = vmatprep.subr.mxu1 %v890_v36  ;;  %1423 = vmatpush3.msra.mxu0 %v894_v37 }
 0x331   :  { %981 = vmatpush1.msra.mxu1 %v889_v38  ;;  %1424 = vmatprep.subr.mxu0 %v1766_v0 }
 0x332   :  { %982 = vmatprep.subr.mxu1 %v887_v39  ;;  %1425 = vmatpush3.msra.mxu0 %v891_v40 }
 0x333   :  { %983 = vmatpush1.msra.mxu1 %v886_v41  ;;  %1426 = vmatprep.subr.mxu0 %v1766_v0 }
 0x334   :  { %1017 = vmatmul.mubr.f32.vlgmr.msra.gmra.mxu1 %v1894_v3  ;;  %1427 = vmatpush3.msra.mxu0 %v888_v42 }
 0x335   :  { %1428 = vmatprep.mubr.msk.f32.mxu0 %vm1767_vm0, %v1766_v0  ;;  %1431 = vmatprep.subr.mxu1 %v1766_v0 }
 0x336   :  { %1429 = vmatmul.mubr.f32.vlgmr.msra.gmra.mxu0 %v1894_v3  ;;  %1463 = vmatprep.mubr.msk.f32.mxu1 %vm1767_vm0, %v1766_v0 }
 0x337   :  { %1432 = vmatpush3.msra.mxu1 %v1125_v43 }
 0x338   :  { %1433 = vmatprep.subr.mxu1 %v1766_v0 }
 0x339   :  { %1434 = vmatpush3.msra.mxu1 %v1124_v44 }
 0x33a   :  { %1435 = vmatprep.subr.mxu1 %v1766_v0 }
 0x33b   :  { %1436 = vmatpush3.msra.mxu1 %v1123_v45 }
 0x33c   :  { %1437 = vmatprep.subr.mxu1 %v1766_v0 }
 0x33d   :  { %1438 = vmatpush3.msra.mxu1 %v1122_v46 }
 0x33e   :  { %1439 = vmatprep.subr.mxu1 %v1766_v0 }
 0x33f   :  { %1440 = vmatpush3.msra.mxu1 %v1121_v47 }
 0x340   :  { %1441 = vmatprep.subr.mxu1 %v1766_v0 }
 0x341   :  { %1442 = vmatpush3.msra.mxu1 %v1120_v48 }
 0x342   :  { %1443 = vmatprep.subr.mxu1 %v1766_v0 }
 0x343   :  { %1444 = vmatpush3.msra.mxu1 %v1119_v49 }
 0x344   :  { %1445 = vmatprep.subr.mxu1 %v1766_v0 }
 0x345   :  { %1446 = vmatpush3.msra.mxu1 %v1118_v50 }
 0x346   :  { %1447 = vmatprep.subr.mxu1 %v1766_v0 }
 0x347   :  { %1448 = vmatpush3.msra.mxu1 %v1117_v51 }
 0x348   :  { %1449 = vmatprep.subr.mxu1 %v1766_v0 }
 0x349   :  { %1450 = vmatpush3.msra.mxu1 %v1116_v52 }
 0x34a   :  { %1451 = vmatprep.subr.mxu1 %v1766_v0 }
 0x34b   :  { %1452 = vmatpush3.msra.mxu1 %v1115_v53 }
 0x34c   :  { %1453 = vmatprep.subr.mxu1 %v1766_v0 }
 0x34d   :  { %1454 = vmatpush3.msra.mxu1 %v1114_v54 }
 0x34e   :  { %1455 = vmatprep.subr.mxu1 %v1766_v0 }
 0x34f   :  { %1456 = vmatpush3.msra.mxu1 %v1113_v55 }
 0x350   :  { %1457 = vmatprep.subr.mxu1 %v1766_v0 }
 0x351   :  { %1458 = vmatpush3.msra.mxu1 %v1112_v56 }
 0x352   :  { %1459 = vmatprep.subr.mxu1 %v1766_v0 }
 0x353   :  { %1460 = vmatpush3.msra.mxu1 %v1111_v57 }
 0x354   :  { %1461 = vmatprep.subr.mxu1 %v1766_v0  ;;  %v737_v0 = vrot.slane %v728_v61, %v1926_v30 }
 0x355   :  { %1462 = vmatpush3.msra.mxu1 %v1110_v58 }
 0x3d4   :  { %v882_v59 = vpop.f32.mrf.mxu0  ;;  %v811_v62 = vpop.f32.mrf.mxu1 }
 0x3d5   :  { %v812_v6 = vadd.f32 %v811_v62, %v733_v1  ;;  %v883_v24 = vadd.f32 %v882_v59, %v741_v20 }
 0x3d6   :  { %v1395_v60 = vpop.f32.mrf.mxu0  ;;  %v813_v4 = vpop.f32.mrf.mxu1 }
 0x3d7   :  { %v814_v15 = vadd.f32 %v813_v4, %v737_v0 }
 0x3f4   :  { %v1018_v5 = vpop.f32.mrf.mxu1 }
 0x3f5   :  { %v1019_v7 = vadd.f32 %v1018_v5, %v940_v2 }
 0x3f6   :  { %v1020_v9 = vpop.f32.mrf.mxu1  ;;  %v1089_v10 = vpop.f32.mrf.mxu0 }
 0x3f7   :  { %v1093_v11 = vadd.f32 %v1019_v7, %v812_v6  ;;  %v1021_v14 = vadd.f32 %v1020_v9, %v944_v8  ;;  %v1090_v21 = vadd.f32 %v1089_v10, %v948_v18 }
 0x3f8   :  { %v1430_v12 = vpop.f32.mrf.mxu0 }
 0x3f9   :  { %v1094_v13 = vmul.f32 0.5, %v1093_v11  ;;  %v1098_v16 = vadd.f32 %v1021_v14, %v814_v15 }
 0x3fb   :  { %1489 = vtanh.f32 %v1094_v13  ;;  %v1099_v17 = vmul.f32 0.5, %v1098_v16 }
 0x3fd   :  { %1491 = vtanh.f32 %v1099_v17 }
 0x408   :  { %v1490_v19 = vpop.eup %1489 }
 0x409   :  { %v1096_v22 = vadd.f32 1.0, %v1490_v19 }
 0x40a   :  { %v1492_v26 = vpop.eup %1491 }
 0x40b   :  { %v1097_v23 = vmul.f32 0.5, %v1096_v22  ;;  %v1101_v29 = vadd.f32 1.0, %v1492_v26 }
 0x40d   :  { %v1103_v25 = vmul.f32 %v1097_v23, %v1090_v21  ;;  %v1102_v31 = vmul.f32 0.5, %v1101_v29 }
 0x40f   :  { %v1104_v30 = vadd.f32 %v1103_v25, %v883_v24  ;;  %v1106_v32 = vsub.f32 1.0, %v1102_v31  ;;  %v1108_v35 = vmul.f32 %v1102_v31, %v1894_v3 }
 0x411   :  { %1493 = vtanh.f32 %v1104_v30 }
 0x41e   :  { %v1494_v33 = vpop.eup %1493 }
 0x41f   :  { %v1107_v34 = vmul.f32 %v1494_v33, %v1106_v32 }
 0x421   :  { %v1109_v27 = vadd.f32 %v1108_v35, %v1107_v34 }
 0x423   :  { %1464 = vmatmul.mubr.f32.vlgmr.msra.gmra.mxu1 %v1109_v27  ;;  %1199 = vst [vmem:[#allocation18] sm:$0x1] %v1109_v27 }
 0x424   :  { %1688 = shalt.err (!%p1685_p7)
}
 0x425   :  { %1219 = dma.vmem_to_hbm [thread:$0]  %s1217_s19, 16, %s2016_s11, [#allocation19]  }
 0x426   :  { %s1770_s17 = smov [#allocation20]  }
 0x427   :  { %s1226_s18 = sshll.u32 %s1770_s17, 4  ;;  %s1227_s18 = int_to_ptr.vmem [resolvable:$true] %s1226_s18 }
 0x428   :  { %s1697_s21 = scalar_lea.vmem %s1227_s18, 32  ;;  %p1702_p9 = scmp.lt.s32.totalorder %s1227_s18, %s1227_s18 }
 0x429   :  { %p1698_p8 = scmp.ne.s32.totalorder %s1227_s18, %s1697_s21  ;;  %p1703_p10 = scmp.lt.s32.totalorder %s1697_s21, %s1697_s21 }
 0x42b   :  { %p1704_p11 = por %p1703_p10, %p1702_p9 }
 0x42d   :  { %p1705_p12 = pnand %p1704_p11, %p1698_p8 }
 0x42f   :  { %1708 = shalt.err (!%p1705_p12)
}
 0x430   :  { %1229 = dma.vmem_to_hbm [thread:$0]  %s1227_s18, 32, %s2017_s12, [#allocation19]   ;;  %v1126_v3 = vld [vmem:[#allocation16 + $0x4] ss:$0 sm:$0xff] }
 0x431   :  { %s1771_s11 = smov [#allocation17]  }
 0x432   :  { %s1206_s8 = sshll.u32 %s1771_s11, 4  ;;  %s1207_s8 = int_to_ptr.vmem [resolvable:$true] %s1206_s8 }
 0x433   :  { %s1717_s23 = scalar_lea.vmem %s1207_s8, 16  ;;  %s1721_s0 = scalar_lea.vmem %s1207_s8, 32 }
 0x434   :  { %p1718_p13 = scmp.ne.s32.totalorder %s1207_s8, %s1717_s23  ;;  %p1722_p0 = scmp.lt.s32.totalorder %s1207_s8, %s1207_s8 }
 0x435   :  { %p1723_p1 = scmp.lt.s32.totalorder %s1721_s0, %s1717_s23 }
 0x437   :  { %p1724_p2 = por %p1723_p1, %p1722_p0 }
 0x439   :  { %p1725_p3 = pnand %p1724_p2, %p1718_p13 }
 0x4e3   :  { %v1193_v36 = vpop.f32.mrf.mxu1 }
 0x4e4   :  { %v1194_v37 = vadd.f32 %v1193_v36, %v1126_v3 }
 0x4e5   :  { %v1465_v38 = vpop.f32.mrf.mxu1 }
 0x4e6   :  { %1495 = vtanh.f32 %v1194_v37 }
 0x4f3   :  { %v1496_v39 = vpop.eup %1495 }
 0x4f4   :  { %1198 = vst [vmem:[#allocation17] sm:$0x1] %v1496_v39 }
 0x4f5   :  { %1728 = shalt.err (!%p1725_p3)
}
 0x4f6   :  { %1209 = dma.vmem_to_hbm [thread:$0]  %s1207_s8, 16, %s2015_s10, [#allocation4]  }
 0x4f7   :  { %1747 = dma.done.wait [#allocation4], 16  }
 0x4f8   :  { %1748 = vsyncadd [#allocation4], 4294967280 }
 0x4f9   :  { %1749 = dma.done.wait [#allocation19], 48  }
 0x4fa   :  { %1750 = vsyncadd [#allocation19], 4294967248 }
 0x4fb   :  { %1239 = vsyncpa [#allocation3], 1 }
 0x4fc   :  { %1240 = vsyncpa [#allocation6], 1 }
 0x4fd   :  { %1241 = vsyncpa [#allocation9], 1 }
 0x4fe   :  { %1242 = vsyncpa [#allocation12], 1 }
 0x4ff   :  { %1243 = vsyncpa [#allocation15], 1 }
 0x500   :  { %1244 = vsyncpa [#allocation4], 1 }
 0x501   :  { %1245 = vsyncpa [#allocation19], 1 }

</bundles_post_ra>
